<compile_context>
chip_gen: v7x
topology: tpu7x:2x2x1
jax: 0.10.0
libtpu: 0.0.40
codegen_flags: <defaults>
</compile_context>

<pallas_src>
import jax
import jax.numpy as jnp
import numpy as np
from jax.experimental import pallas as pl
from jax.experimental.pallas import tpu as pltpu


# ----------------------------- kernel ---------------------------------------

def _elu(h):
    # ELU(alpha=1): x if x > 0 else exp(x) - 1   (computed in f32)
    return jnp.where(h > 0, h, jnp.exp(jnp.minimum(h, 0.0)) - 1.0)


def _down_kernel(x_ref, w1_ref, b1_ref, w2_ref, b2_ref, o_ref):
    # Batch-major layout: x_ref tile is (tile_b, input_dim).
    # Cast activations to bf16 for the MXU; accumulate in f32.
    xb = x_ref[...].astype(jnp.bfloat16)

    # net1: Linear -> (Dropout = identity) -> ELU
    h1 = jnp.dot(xb, w1_ref[...], preferred_element_type=jnp.float32) + b1_ref[...]
    h1 = _elu(h1)

    # net2: Linear -> (Dropout = identity) -> ELU
    h2 = jnp.dot(h1.astype(jnp.bfloat16), w2_ref[...],
                 preferred_element_type=jnp.float32) + b2_ref[...]
    h2 = _elu(h2)

    o_ref[...] = h2.astype(o_ref.dtype)


# ----------------------------- wrapper ---------------------------------------

def _pick_tile_b(B, max_tile=2048):
    """Pick a batch tile: multiple of 128, as large as sensible (amortizes the
    ~0.35us/step overhead), but capped so n_tiles >= 2 when B allows it
    (keeps both v7x TensorCores fed via the parallel batch axis)."""
    if B <= 128:
        return 128
    half = pl.cdiv(B, 2)
    half_up = pl.cdiv(half, 128) * 128
    return int(min(max_tile, half_up))


def down_forward(x, params, *, tile_b=None):
    """x: (B, input_dim); params = (W1 (out,in), b1 (out,), W2 (out,out), b2 (out,))
    Weights are in native PyTorch layout (out_features, in_features)."""
    w1, b1, w2, b2 = params
    B, din = x.shape
    dout = w1.shape[0]

    if tile_b is None:
        tile_b = _pick_tile_b(B)

    # Pre-transpose (tiny) weights to (in, out) so the kernel computes x @ W^T
    # directly; cast them to bf16 for the MXU.  Biases stay f32, broadcast over
    # the batch (sublane) axis.
    w1t = jnp.transpose(w1).astype(jnp.bfloat16)   # (din, dout)
    w2t = jnp.transpose(w2).astype(jnp.bfloat16)   # (dout, dout)
    b1c = b1.reshape(1, -1).astype(jnp.float32)    # (1, dout)
    b2c = b2.reshape(1, -1).astype(jnp.float32)

    # Pad batch up to a multiple of tile_b only when needed.
    n_tiles = pl.cdiv(B, tile_b)
    b_pad = n_tiles * tile_b
    x_in = x if b_pad == B else jnp.pad(x, ((0, b_pad - B), (0, 0)))

    out = pl.pallas_call(
        _down_kernel,
        grid=(n_tiles,),
        in_specs=[
            pl.BlockSpec((tile_b, din), lambda i: (i, 0)),   # x, tiled over batch
            pl.BlockSpec(w1t.shape, lambda i: (0, 0)),       # W1^T resident
            pl.BlockSpec(b1c.shape, lambda i: (0, 0)),       # b1 resident
            pl.BlockSpec(w2t.shape, lambda i: (0, 0)),       # W2^T resident
            pl.BlockSpec(b2c.shape, lambda i: (0, 0)),       # b2 resident
        ],
        out_specs=pl.BlockSpec((tile_b, dout), lambda i: (i, 0)),
        out_shape=jax.ShapeDtypeStruct((b_pad, dout), jnp.float32),
        compiler_params=pltpu.CompilerParams(dimension_semantics=("parallel",)),
    )(x_in, w1t, b1c, w2t, b2c)

    return out if b_pad == B else out[:B]


# ----------------------------- params / reference ----------------------------

def init_params(key, input_dim, output_dim):
    """Deterministic init mirroring nn.Linear default U(-1/sqrt(in), 1/sqrt(in)).
    Weights stored in PyTorch layout (out_features, in_features)."""
    dims = [(input_dim, output_dim), (output_dim, output_dim)]
    params = []
    for i, (fin, fout) in enumerate(dims):
        kw, kb = jax.random.split(jax.random.fold_in(key, i))
        bound = 1.0 / float(np.sqrt(fin))
        w = jax.random.uniform(kw, (fout, fin), jnp.float32, -bound, bound)
        b = jax.random.uniform(kb, (fout,), jnp.float32, -bound, bound)
        params.extend([w, b])
    return tuple(params)


def down_reference(x, params):
    """Pure-JAX f32 reference of the PyTorch forward (dropout = identity, eval mode)."""
    w1, b1, w2, b2 = params

    def elu(h):
        return jnp.where(h > 0, h, jnp.exp(jnp.minimum(h, 0.0)) - 1.0)

    h1 = elu(jnp.dot(x, w1.T, preferred_element_type=jnp.float32) + b1)
    h2 = elu(jnp.dot(h1, w2.T, preferred_element_type=jnp.float32) + b2)
    return h2


# ----------------------------- main ------------------------------------------

if __name__ == "__main__":
    input_dim = 64
    output_dim = 32
    batch = 16

    key = jax.random.PRNGKey(0)
    kx, kp = jax.random.split(key)
    x = jax.random.normal(kx, (batch, input_dim), jnp.float32)
    params = init_params(kp, input_dim, output_dim)

    out = down_forward(x, params)
    out = jax.block_until_ready(out)

    ref = down_reference(x, params)
    # bf16 matmul operands with f32 accumulation -> relaxed tolerance.
    np.testing.assert_allclose(np.asarray(out), np.asarray(ref), rtol=2e-2, atol=2e-2)

    print("KERNEL_OK")
</pallas_src>

<mosaic_0001>
module attributes {stable_mosaic.version = 11 : i64} {
  func.func @_down_kernel(%arg0: i32, %arg1: memref<128x64xf32, #tpu.memory_space<vmem>>, %arg2: memref<64x32xbf16, #tpu.memory_space<vmem>>, %arg3: memref<1x32xf32, #tpu.memory_space<vmem>>, %arg4: memref<32x32xbf16, #tpu.memory_space<vmem>>, %arg5: memref<1x32xf32, #tpu.memory_space<vmem>>, %arg6: memref<128x32xf32, #tpu.memory_space<vmem>>) attributes {dimension_semantics = [#tpu.dimension_semantics<parallel>], iteration_bounds = array<i64: 1>, scalar_prefetch = 0 : i64, scratch_operands = 0 : i64, tpu.core_type = #tpu.core_type<tc>, window_params = [{transform_indices = @transform_0, window_bounds = array<i64: 128, 64>}, {pipeline_mode = #tpu.pipeline_mode<synchronous>, transform_indices = @transform_1, window_bounds = array<i64: 64, 32>}, {pipeline_mode = #tpu.pipeline_mode<synchronous>, transform_indices = @transform_2, window_bounds = array<i64: 1, 32>}, {pipeline_mode = #tpu.pipeline_mode<synchronous>, transform_indices = @transform_3, window_bounds = array<i64: 32, 32>}, {pipeline_mode = #tpu.pipeline_mode<synchronous>, transform_indices = @transform_4, window_bounds = array<i64: 1, 32>}, {transform_indices = @transform_5, window_bounds = array<i64: 128, 32>}]} {
    %c0 = arith.constant 0 : index
    %c0_0 = arith.constant 0 : index
    %0 = vector.load %arg1[%c0, %c0_0] : memref<128x64xf32, #tpu.memory_space<vmem>>, vector<128x64xf32>
    %1 = arith.truncf %0 : vector<128x64xf32> to vector<128x64xbf16>
    %c0_1 = arith.constant 0 : index
    %c0_2 = arith.constant 0 : index
    %2 = vector.load %arg2[%c0_1, %c0_2] : memref<64x32xbf16, #tpu.memory_space<vmem>>, vector<64x32xbf16>
    %cst = arith.constant dense<0.000000e+00> : vector<128x32xf32>
    %3 = tpu.matmul %1, %2, %cst {dimension_numbers = #tpu.dot_dimension_numbers<[1], [0], [0], [1], [0, 0, 1, 1], [], []>} : vector<128x64xbf16>, vector<64x32xbf16>, vector<128x32xf32> -> vector<128x32xf32>
    %c0_3 = arith.constant 0 : index
    %c0_4 = arith.constant 0 : index
    %4 = vector.load %arg3[%c0_3, %c0_4] : memref<1x32xf32, #tpu.memory_space<vmem>>, vector<1x32xf32>
    %5 = vector.broadcast %4 : vector<1x32xf32> to vector<128x32xf32>
    %6 = arith.addf %3, %5 : vector<128x32xf32>
    %cst_5 = arith.constant 0.000000e+00 : f32
    %7 = vector.broadcast %cst_5 : f32 to vector<128x32xf32>
    %8 = arith.cmpf ogt, %6, %7 : vector<128x32xf32>
    %cst_6 = arith.constant 0.000000e+00 : f32
    %9 = vector.broadcast %cst_6 : f32 to vector<128x32xf32>
    %10 = arith.minimumf %6, %9 : vector<128x32xf32>
    %11 = math.exp %10 : vector<128x32xf32>
    %cst_7 = arith.constant 1.000000e+00 : f32
    %12 = vector.broadcast %cst_7 : f32 to vector<128x32xf32>
    %13 = arith.subf %11, %12 : vector<128x32xf32>
    %14 = arith.select %8, %6, %13 : vector<128x32xi1>, vector<128x32xf32>
    %15 = arith.truncf %14 : vector<128x32xf32> to vector<128x32xbf16>
    %c0_8 = arith.constant 0 : index
    %c0_9 = arith.constant 0 : index
    %16 = vector.load %arg4[%c0_8, %c0_9] : memref<32x32xbf16, #tpu.memory_space<vmem>>, vector<32x32xbf16>
    %cst_10 = arith.constant dense<0.000000e+00> : vector<128x32xf32>
    %17 = tpu.matmul %15, %16, %cst_10 {dimension_numbers = #tpu.dot_dimension_numbers<[1], [0], [0], [1], [0, 0, 1, 1], [], []>} : vector<128x32xbf16>, vector<32x32xbf16>, vector<128x32xf32> -> vector<128x32xf32>
    %c0_11 = arith.constant 0 : index
    %c0_12 = arith.constant 0 : index
    %18 = vector.load %arg5[%c0_11, %c0_12] : memref<1x32xf32, #tpu.memory_space<vmem>>, vector<1x32xf32>
    %19 = vector.broadcast %18 : vector<1x32xf32> to vector<128x32xf32>
    %20 = arith.addf %17, %19 : vector<128x32xf32>
    %cst_13 = arith.constant 0.000000e+00 : f32
    %21 = vector.broadcast %cst_13 : f32 to vector<128x32xf32>
    %22 = arith.cmpf ogt, %20, %21 : vector<128x32xf32>
    %cst_14 = arith.constant 0.000000e+00 : f32
    %23 = vector.broadcast %cst_14 : f32 to vector<128x32xf32>
    %24 = arith.minimumf %20, %23 : vector<128x32xf32>
    %25 = math.exp %24 : vector<128x32xf32>
    %cst_15 = arith.constant 1.000000e+00 : f32
    %26 = vector.broadcast %cst_15 : f32 to vector<128x32xf32>
    %27 = arith.subf %25, %26 : vector<128x32xf32>
    %28 = arith.select %22, %20, %27 : vector<128x32xi1>, vector<128x32xf32>
    %c0_16 = arith.constant 0 : index
    %c0_17 = arith.constant 0 : index
    %29 = vector.load %arg6[%c0_16, %c0_17] : memref<128x32xf32, #tpu.memory_space<vmem>>, vector<128x32xf32>
    tpu.vector_store %arg6[%c0_16, %c0_17], %28 {strides = array<i32>} : memref<128x32xf32, #tpu.memory_space<vmem>>, vector<128x32xf32>,
    return
  }
  func.func @transform_0(%arg0: i32) -> (i32, i32) {
    %c0_i32 = arith.constant 0 : i32
    %c0_i32_0 = arith.constant 0 : i32
    return %arg0, %c0_i32 : i32, i32
  }
  func.func @transform_1(%arg0: i32) -> (i32, i32) {
    %c0_i32 = arith.constant 0 : i32
    %c0_i32_0 = arith.constant 0 : i32
    %c0_i32_1 = arith.constant 0 : i32
    return %c0_i32, %c0_i32_0 : i32, i32
  }
  func.func @transform_2(%arg0: i32) -> (i32, i32) {
    %c0_i32 = arith.constant 0 : i32
    %c0_i32_0 = arith.constant 0 : i32
    %c0_i32_1 = arith.constant 0 : i32
    return %c0_i32, %c0_i32_0 : i32, i32
  }
  func.func @transform_3(%arg0: i32) -> (i32, i32) {
    %c0_i32 = arith.constant 0 : i32
    %c0_i32_0 = arith.constant 0 : i32
    %c0_i32_1 = arith.constant 0 : i32
    return %c0_i32, %c0_i32_0 : i32, i32
  }
  func.func @transform_4(%arg0: i32) -> (i32, i32) {
    %c0_i32 = arith.constant 0 : i32
    %c0_i32_0 = arith.constant 0 : i32
    %c0_i32_1 = arith.constant 0 : i32
    return %c0_i32, %c0_i32_0 : i32, i32
  }
  func.func @transform_5(%arg0: i32) -> (i32, i32) {
    %c0_i32 = arith.constant 0 : i32
    %c0_i32_0 = arith.constant 0 : i32
    return %arg0, %c0_i32 : i32, i32
  }
}

</mosaic_0001>

<bundles_post_ra>
// kernel: tpu_custom_call.1
= control target key start
LH: loop header
LB: loop body
LE: loop exit
PB: predicated region body
PF: predicated region fallthrough
CT: control target
= control target key end

     0   :  { %vm84_vm0 = vcmask 523264   ;;  %vm333_vm2 = vcmask 261120   ;;  %s1102_s1 = inlined_call_operand.vmem [shape: bf16[64,32], index: 1, kind: input, shape index: {}]   ;;  %s1103_s0 = inlined_call_operand.vmem [shape: f32[128,64], index: 0, kind: input, shape index: {}]   ;;  %s1104_s3 = inlined_call_operand.vmem [shape: bf16[32,32], index: 3, kind: input, shape index: {}]   ;;  %s1105_s2 = inlined_call_operand.vmem [shape: f32[1,32], index: 2, kind: input, shape index: {}]   ;;  %s1106_s4 = inlined_call_operand.vmem [shape: f32[1,32], index: 4, kind: input, shape index: {}]   ;;  %s1107_s5 = inlined_call_operand.vmem [shape: f32[128,32], index: 5, kind: output, shape index: {}]  }
   0x1   :  { %v693_v0 = vld [vmem:[%s1102_s1] sm:$0xff]   ;;  %v694_v1 = vld [vmem:[%s1102_s1 + $0x8] sm:$0xff]   ;;  %v695_v2 = vld [vmem:[%s1102_s1 + $0x10] sm:$0xff]  }
   0x2   :  { %649 = vmatprep.subr.bf16.mxu0 %v693_v0  ;;  %v21_v3 = vld [vmem:[%s1103_s0] sm:$0xff]  ;;  %v22_v4 = vld [vmem:[%s1103_s0 + $0x8] sm:$0xff]  ;;  %v696_v6 = vld [vmem:[%s1102_s1 + $0x18] sm:$0xff]  }
   0x3   :  { %650 = vmatpush3.bf16.msra.mxu0 %v693_v0  ;;  %v37_v5 = vpack.c.bf16 %v22_v4, %v21_v3  ;;  %v23_v7 = vld [vmem:[%s1103_s0 + $0x10] sm:$0xff]  ;;  %v24_v8 = vld [vmem:[%s1103_s0 + $0x18] sm:$0xff]  ;;  %v25_v9 = vld [vmem:[%s1103_s0 + $0x20] sm:$0xff] }
   0x4   :  { %651 = vmatprep.subr.bf16.mxu0 %v694_v1  ;;  %v26_v10 = vld [vmem:[%s1103_s0 + $0x28] sm:$0xff]  ;;  %v38_v11 = vpack.c.bf16 %v24_v8, %v23_v7  ;;  %v27_v13 = vld [vmem:[%s1103_s0 + $0x30] sm:$0xff]  ;;  %v28_v14 = vld [vmem:[%s1103_s0 + $0x38] sm:$0xff] }
   0x5   :  { %657 = vmatprep.mubr.msk.bf16.mxu0 %vm84_vm0, %v37_v5  ;;  %v39_v12 = vpack.c.bf16 %v26_v10, %v25_v9  ;;  %v29_v15 = vld [vmem:[%s1103_s0 + $0x40] sm:$0xff]  ;;  %v30_v16 = vld [vmem:[%s1103_s0 + $0x48] sm:$0xff]  ;;  %v40_v17 = vpack.c.bf16 %v28_v14, %v27_v13  ;;  %v31_v19 = vld [vmem:[%s1103_s0 + $0x50] sm:$0xff] }
   0x6   :  { %v41_v18 = vpack.c.bf16 %v30_v16, %v29_v15  ;;  %v32_v20 = vld [vmem:[%s1103_s0 + $0x58] sm:$0xff]  ;;  %v33_v21 = vld [vmem:[%s1103_s0 + $0x60] sm:$0xff]  ;;  %v34_v22 = vld [vmem:[%s1103_s0 + $0x68] sm:$0xff] }
   0x7   :  { %652 = vmatpush3.bf16.msra.mxu0 %v694_v1  ;;  %v42_v23 = vpack.c.bf16 %v32_v20, %v31_v19  ;;  %v43_v24 = vpack.c.bf16 %v34_v22, %v33_v21  ;;  %v35_v25 = vld [vmem:[%s1103_s0 + $0x70] sm:$0xff]  ;;  %v36_v26 = vld [vmem:[%s1103_s0 + $0x78] sm:$0xff]  ;;  %v697_v28 = vld [vmem:[%s1104_s3] sm:$0xff]  }
   0x8   :  { %653 = vmatprep.subr.bf16.mxu0 %v695_v2  ;;  %v44_v27 = vpack.c.bf16 %v36_v26, %v35_v25  ;;  %673 = vmatprep.subr.bf16.mxu1 %v697_v28  ;;  %v698_v29 = vld [vmem:[%s1104_s3 + $0x8] sm:$0xff]   ;;  %v870_v30 = vld [vmem:[%s1105_s2] ss:$0 sm:$0xff] }
   0x9   :  { %674 = vmatpush3.bf16.msra.mxu1 %v697_v28 }
   0xa   :  { %675 = vmatprep.subr.bf16.mxu1 %v698_v29 }
   0xb   :  { %654 = vmatpush3.bf16.msra.mxu0 %v695_v2 }
   0xc   :  { %655 = vmatprep.subr.bf16.mxu0 %v696_v6 }
   0xd   :  { %676 = vmatpush3.bf16.msra.mxu1 %v698_v29 }
   0xf   :  { %656 = vmatpush3.bf16.msra.mxu0 %v696_v6 }
  0x12   :  { %658 = vmatmul.mubr.msk.bf16.vlgmr.msra.gmra.mrb[0].mxu0 %vm84_vm0, %v38_v11 }
  0x13   :  { %661 = vmatprep.mubr.msk.bf16.mxu0 %vm84_vm0, %v39_v12 }
  0x1a   :  { %662 = vmatmul.mubr.msk.bf16.gmra.mrb[4].mxu0 %vm84_vm0, %v40_v17 }
  0x1b   :  { %665 = vmatprep.mubr.msk.bf16.mxu0 %vm84_vm0, %v41_v18 }
  0x22   :  { %666 = vmatmul.mubr.msk.bf16.gmra.mrb[8].mxu0 %vm84_vm0, %v42_v23 }
  0x23   :  { %669 = vmatprep.mubr.msk.bf16.mxu0 %vm84_vm0, %v43_v24 }
  0x2a   :  { %670 = vmatmul.mubr.msk.bf16.gmra.mrb[12].mxu0 %vm84_vm0, %v44_v27 }
  0xe5   :  { %v659_v31 = vpop.f32.mrb[0].mxu0 }
  0xe6   :  { %v873_v32 = vadd.f32 %v659_v31, %v870_v30  ;;  %v143_v33 = vpop.f32.mrb[1].mxu0 }
  0xe7   :  { %v876_v34 = vadd.f32 %v870_v30, %v143_v33  ;;  %v660_v35 = vpop.f32.mrb[2].mxu0 }
  0xe8   :  { %v224_v36 = vmin.f32 %v873_v32, 0.0  ;;  %v155_v37 = vadd.f32 %v660_v35, %v870_v30  ;;  %v146_v38 = vpop.f32.mrb[3].mxu0  ;;  %vm208_vm1 = vcmp.gt.f32.partialorder %v873_v32, 0.0 }
  0xe9   :  { %v222_v39 = vmin.f32 %v876_v34, 0.0  ;;  %v882_v40 = vadd.f32 %v870_v30, %v146_v38  ;;  %vm206_vm3 = vcmp.gt.f32.partialorder %v876_v34, 0.0 }
  0xea   :  { %v242_v41 = vmul.f32 1.442695, %v224_v36  ;;  %v225_v42 = vmin.f32 %v155_v37, 0.0  ;;  %vm209_vm4 = vcmp.gt.f32.partialorder %v155_v37, 0.0 }
  0xeb   :  { %v238_v43 = vmul.f32 1.442695, %v222_v39  ;;  %v223_v44 = vmin.f32 %v882_v40, 0.0  ;;  %vm207_vm5 = vcmp.gt.f32.partialorder %v882_v40, 0.0 }
  0xec   :  { %699 = vpow2.f32 %v242_v41  ;;  %v244_v45 = vmul.f32 1.442695, %v225_v42 }
  0xed   :  { %701 = vpow2.f32 %v238_v43  ;;  %v240_v46 = vmul.f32 1.442695, %v223_v44  ;;  %v663_v47 = vpop.f32.mrb[4].mxu0 }
  0xee   :  { %703 = vpow2.f32 %v244_v45  ;;  %v886_v48 = vadd.f32 %v663_v47, %v870_v30  ;;  %v159_v49 = vpop.f32.mrb[5].mxu0 }
  0xef   :  { %705 = vpow2.f32 %v240_v46  ;;  %v889_v50 = vadd.f32 %v870_v30, %v159_v49  ;;  %v664_v51 = vpop.f32.mrb[6].mxu0 }
  0xf0   :  { %v228_v52 = vmin.f32 %v886_v48, 0.0  ;;  %v893_v53 = vadd.f32 %v664_v51, %v870_v30  ;;  %v162_v54 = vpop.f32.mrb[7].mxu0  ;;  %vm212_vm6 = vcmp.gt.f32.partialorder %v886_v48, 0.0 }
  0xf1   :  { %v226_v55 = vmin.f32 %v889_v50, 0.0  ;;  %v897_v56 = vadd.f32 %v870_v30, %v162_v54  ;;  %vm210_vm7 = vcmp.gt.f32.partialorder %v889_v50, 0.0 }
  0xf2   :  { %v250_v57 = vmul.f32 1.442695, %v228_v52  ;;  %v229_v58 = vmin.f32 %v893_v53, 0.0  ;;  %vm213_vm8 = vcmp.gt.f32.partialorder %v893_v53, 0.0 }
  0xf3   :  { %v246_v59 = vmul.f32 1.442695, %v226_v55  ;;  %v227_v60 = vmin.f32 %v897_v56, 0.0  ;;  %vm211_vm9 = vcmp.gt.f32.partialorder %v897_v56, 0.0 }
  0xf4   :  { %707 = vpow2.f32 %v250_v57  ;;  %v252_v61 = vmul.f32 1.442695, %v229_v58 }
  0xf5   :  { %709 = vpow2.f32 %v246_v59  ;;  %v248_v62 = vmul.f32 1.442695, %v227_v60  ;;  %v667_v63 = vpop.f32.mrb[8].mxu0 }
  0xf6   :  { %v700_v0 = vpop.eup %699  ;;  %711 = vpow2.f32 %v252_v61  ;;  %v902_v1 = vadd.f32 %v667_v63, %v870_v30  ;;  %v175_v2 = vpop.f32.mrb[9].mxu0 }
  0xf7   :  { %v702_v3 = vpop.eup %701  ;;  %v586_v4 = vadd.f32 -1.0, %v700_v0  ;;  %713 = vpow2.f32 %v248_v62  ;;  %v905_v5 = vadd.f32 %v870_v30, %v175_v2  ;;  %v668_v6 = vpop.f32.mrb[10].mxu0 }
  0xf8   :  { %v704_v7 = vpop.eup %703  ;;  %v232_v8 = vmin.f32 %v902_v1, 0.0  ;;  %v910_v9 = vadd.f32 %v668_v6, %v870_v30  ;;  %v178_v10 = vpop.f32.mrb[11].mxu0  ;;  %v584_v14 = vadd.f32 -1.0, %v702_v3  ;;  %vm216_vm10 = vcmp.gt.f32.partialorder %v902_v1, 0.0 }
  0xf9   :  { %v706_v11 = vpop.eup %705  ;;  %v587_v12 = vadd.f32 -1.0, %v704_v7  ;;  %v230_v13 = vmin.f32 %v905_v5, 0.0  ;;  %v916_v17 = vadd.f32 %v870_v30, %v178_v10  ;;  %v288_v18 = vsel %vm208_vm1, %v873_v32, %v586_v4 }
  0xfa   :  { %v258_v15 = vmul.f32 1.442695, %v232_v8  ;;  %v233_v16 = vmin.f32 %v910_v9, 0.0  ;;  %v585_v21 = vadd.f32 -1.0, %v706_v11  ;;  %v286_v26 = vsel %vm206_vm3, %v876_v34, %v584_v14 }
  0xfb   :  { %v289_v19 = vsel %vm209_vm4, %v155_v37, %v587_v12  ;;  %v254_v20 = vmul.f32 1.442695, %v230_v13  ;;  %v231_v24 = vmin.f32 %v916_v17, 0.0  ;;  %vm217_vm11 = vcmp.gt.f32.partialorder %v910_v9, 0.0 }
  0xfc   :  { %v303_v22 = vpack.c.bf16 %v289_v19, %v288_v18  ;;  %715 = vpow2.f32 %v258_v15  ;;  %v260_v23 = vmul.f32 1.442695, %v233_v16  ;;  %v287_v27 = vsel %vm207_vm5, %v882_v40, %v585_v21 }
  0xfd   :  { %717 = vpow2.f32 %v254_v20  ;;  %v671_v25 = vpop.f32.mrb[12].mxu0  ;;  %v302_v32 = vpack.c.bf16 %v287_v27, %v286_v26  ;;  %v256_v36 = vmul.f32 1.442695, %v231_v24  ;;  %vm214_vm12 = vcmp.gt.f32.partialorder %v905_v5, 0.0 }
  0xfe   :  { %v708_v28 = vpop.eup %707  ;;  %719 = vpow2.f32 %v260_v23  ;;  %v926_v29 = vadd.f32 %v671_v25, %v870_v30  ;;  %v191_v31 = vpop.f32.mrb[13].mxu0  ;;  %vm215_vm13 = vcmp.gt.f32.partialorder %v916_v17, 0.0  ;;  %v970_v23 = vld [vmem:[%s1106_s4] ss:$0 sm:$0xff] }
  0xff   :  { %v710_v33 = vpop.eup %709  ;;  %v590_v35 = vadd.f32 -1.0, %v708_v28  ;;  %v930_v37 = vadd.f32 %v870_v30, %v191_v31  ;;  %v672_v38 = vpop.f32.mrb[14].mxu0  ;;  %677 = vmatprep.mubr.msk.bf16.mxu1 %vm333_vm2, %v302_v32  ;;  %721 = vpow2.f32 %v256_v36 }
 0x100   :  { %v712_v39 = vpop.eup %711  ;;  %v588_v34 = vadd.f32 -1.0, %v710_v33  ;;  %v236_v40 = vmin.f32 %v926_v29, 0.0  ;;  %v203_v41 = vadd.f32 %v672_v38, %v870_v30  ;;  %v194_v42 = vpop.f32.mrb[15].mxu0  ;;  %678 = vmatmul.mubr.msk.bf16.vlgmr.msra.gmra.mrb[0].mxu1 %vm333_vm2, %v303_v22  ;;  %vm220_vm14 = vcmp.gt.f32.partialorder %v926_v29, 0.0 }
 0x101   :  { %v714_v43 = vpop.eup %713  ;;  %v591_v44 = vadd.f32 -1.0, %v712_v39  ;;  %v292_v45 = vsel %vm212_vm6, %v886_v48, %v590_v35  ;;  %v234_v49 = vmin.f32 %v930_v37, 0.0  ;;  %v195_v55 = vadd.f32 %v870_v30, %v194_v42 }
 0x102   :  { %v589_v46 = vadd.f32 -1.0, %v714_v43  ;;  %v266_v47 = vmul.f32 1.442695, %v236_v40  ;;  %v290_v51 = vsel %vm210_vm7, %v889_v50, %v588_v34  ;;  %v237_v54 = vmin.f32 %v203_v41, 0.0 }
 0x103   :  { %v293_v52 = vsel %vm213_vm8, %v893_v53, %v591_v44  ;;  %v262_v59 = vmul.f32 1.442695, %v234_v49  ;;  %v235_v61 = vmin.f32 %v195_v55, 0.0  ;;  %vm221_vm15 = vcmp.gt.f32.partialorder %v203_v41, 0.0 }
 0x104   :  { %v305_v57 = vpack.c.bf16 %v293_v52, %v292_v45  ;;  %v291_v58 = vsel %vm211_vm9, %v897_v56, %v589_v46  ;;  %723 = vpow2.f32 %v266_v47  ;;  %v268_v48 = vmul.f32 1.442695, %v237_v54 }
 0x105   :  { %v304_v60 = vpack.c.bf16 %v291_v58, %v290_v51  ;;  %725 = vpow2.f32 %v262_v59  ;;  %v264_v2 = vmul.f32 1.442695, %v235_v61  ;;  %vm218_vm0 = vcmp.gt.f32.partialorder %v930_v37, 0.0 }
 0x106   :  { %v716_v62 = vpop.eup %715  ;;  %727 = vpow2.f32 %v268_v48  ;;  %vm219_vm1 = vcmp.gt.f32.partialorder %v195_v55, 0.0 }
 0x107   :  { %v718_v63 = vpop.eup %717  ;;  %v594_v0 = vadd.f32 -1.0, %v716_v62  ;;  %681 = vmatprep.mubr.msk.bf16.mxu1 %vm333_vm2, %v304_v60  ;;  %729 = vpow2.f32 %v264_v2 }
 0x108   :  { %v720_v50 = vpop.eup %719  ;;  %682 = vmatmul.mubr.msk.bf16.gmra.mrb[4].mxu1 %vm333_vm2, %v305_v57  ;;  %v592_v30 = vadd.f32 -1.0, %v718_v63 }
 0x109   :  { %v595_v53 = vadd.f32 -1.0, %v720_v50  ;;  %v722_v56 = vpop.eup %721  ;;  %v296_v3 = vsel %vm216_vm10, %v902_v1, %v594_v0 }
 0x10a   :  { %v593_v7 = vadd.f32 -1.0, %v722_v56  ;;  %v294_v10 = vsel %vm214_vm12, %v905_v5, %v592_v30 }
 0x10b   :  { %v297_v4 = vsel %vm217_vm11, %v910_v9, %v595_v53 }
 0x10c   :  { %v307_v6 = vpack.c.bf16 %v297_v4, %v296_v3  ;;  %v295_v11 = vsel %vm215_vm13, %v916_v17, %v593_v7 }
 0x10d   :  { %v306_v12 = vpack.c.bf16 %v295_v11, %v294_v10 }
 0x10e   :  { %v724_v8 = vpop.eup %723 }
 0x10f   :  { %v726_v13 = vpop.eup %725  ;;  %v598_v14 = vadd.f32 -1.0, %v724_v8  ;;  %685 = vmatprep.mubr.msk.bf16.mxu1 %vm333_vm2, %v306_v12 }
 0x110   :  { %v728_v15 = vpop.eup %727  ;;  %v596_v1 = vadd.f32 -1.0, %v726_v13  ;;  %686 = vmatmul.mubr.msk.bf16.gmra.mrb[8].mxu1 %vm333_vm2, %v307_v6 }
 0x111   :  { %v599_v16 = vadd.f32 -1.0, %v728_v15  ;;  %v730_v9 = vpop.eup %729  ;;  %v300_v18 = vsel %vm220_vm14, %v926_v29, %v598_v14 }
 0x112   :  { %v597_v5 = vadd.f32 -1.0, %v730_v9  ;;  %v298_v20 = vsel %vm218_vm0, %v930_v37, %v596_v1 }
 0x113   :  { %v301_v19 = vsel %vm221_vm15, %v203_v41, %v599_v16 }
 0x114   :  { %v309_v17 = vpack.c.bf16 %v301_v19, %v300_v18  ;;  %v299_v21 = vsel %vm219_vm1, %v195_v55, %v597_v5 }
 0x115   :  { %v308_v22 = vpack.c.bf16 %v299_v21, %v298_v20 }
 0x117   :  { %689 = vmatprep.mubr.msk.bf16.mxu1 %vm333_vm2, %v308_v22 }
 0x118   :  { %690 = vmatmul.mubr.msk.bf16.gmra.mrb[12].mxu1 %vm333_vm2, %v309_v17 }
 0x1d3   :  { %v679_v24 = vpop.f32.mrb[0].mxu1 }
 0x1d4   :  { %v401_v25 = vadd.f32 %v679_v24, %v970_v23  ;;  %v392_v26 = vpop.f32.mrb[1].mxu1 }
 0x1d5   :  { %v393_v27 = vadd.f32 %v970_v23, %v392_v26  ;;  %v680_v28 = vpop.f32.mrb[2].mxu1 }
 0x1d6   :  { %v473_v29 = vmin.f32 %v401_v25, 0.0  ;;  %v404_v31 = vadd.f32 %v680_v28, %v970_v23  ;;  %v395_v32 = vpop.f32.mrb[3].mxu1  ;;  %vm457_vm3 = vcmp.gt.f32.partialorder %v401_v25, 0.0 }
 0x1d7   :  { %v471_v33 = vmin.f32 %v393_v27, 0.0  ;;  %v396_v35 = vadd.f32 %v970_v23, %v395_v32  ;;  %vm455_vm4 = vcmp.gt.f32.partialorder %v393_v27, 0.0 }
 0x1d8   :  { %v491_v36 = vmul.f32 1.442695, %v473_v29  ;;  %v474_v37 = vmin.f32 %v404_v31, 0.0  ;;  %vm458_vm5 = vcmp.gt.f32.partialorder %v404_v31, 0.0 }
 0x1d9   :  { %v487_v38 = vmul.f32 1.442695, %v471_v33  ;;  %v472_v39 = vmin.f32 %v396_v35, 0.0  ;;  %vm456_vm6 = vcmp.gt.f32.partialorder %v396_v35, 0.0 }
 0x1da   :  { %731 = vpow2.f32 %v491_v36  ;;  %v493_v34 = vmul.f32 1.442695, %v474_v37 }
 0x1db   :  { %733 = vpow2.f32 %v487_v38  ;;  %v489_v40 = vmul.f32 1.442695, %v472_v39  ;;  %v683_v41 = vpop.f32.mrb[4].mxu1 }
 0x1dc   :  { %735 = vpow2.f32 %v493_v34  ;;  %v977_v42 = vadd.f32 %v683_v41, %v970_v23  ;;  %v408_v43 = vpop.f32.mrb[5].mxu1 }
 0x1dd   :  { %737 = vpow2.f32 %v489_v40  ;;  %v980_v44 = vadd.f32 %v970_v23, %v408_v43  ;;  %v684_v45 = vpop.f32.mrb[6].mxu1 }
 0x1de   :  { %v477_v46 = vmin.f32 %v977_v42, 0.0  ;;  %v984_v47 = vadd.f32 %v684_v45, %v970_v23  ;;  %v411_v49 = vpop.f32.mrb[7].mxu1  ;;  %vm461_vm7 = vcmp.gt.f32.partialorder %v977_v42, 0.0 }
 0x1df   :  { %v475_v51 = vmin.f32 %v980_v44, 0.0  ;;  %v988_v52 = vadd.f32 %v970_v23, %v411_v49  ;;  %vm459_vm8 = vcmp.gt.f32.partialorder %v980_v44, 0.0 }
 0x1e0   :  { %v499_v54 = vmul.f32 1.442695, %v477_v46  ;;  %v478_v55 = vmin.f32 %v984_v47, 0.0  ;;  %vm462_vm9 = vcmp.gt.f32.partialorder %v984_v47, 0.0 }
 0x1e1   :  { %v495_v57 = vmul.f32 1.442695, %v475_v51  ;;  %v476_v58 = vmin.f32 %v988_v52, 0.0  ;;  %vm460_vm10 = vcmp.gt.f32.partialorder %v988_v52, 0.0 }
 0x1e2   :  { %739 = vpow2.f32 %v499_v54  ;;  %v501_v59 = vmul.f32 1.442695, %v478_v55 }
 0x1e3   :  { %741 = vpow2.f32 %v495_v57  ;;  %v497_v60 = vmul.f32 1.442695, %v476_v58  ;;  %v687_v61 = vpop.f32.mrb[8].mxu1 }
 0x1e4   :  { %v732_v48 = vpop.eup %731  ;;  %743 = vpow2.f32 %v501_v59  ;;  %v993_v0 = vadd.f32 %v687_v61, %v970_v23  ;;  %v424_v2 = vpop.f32.mrb[9].mxu1 }
 0x1e5   :  { %v734_v62 = vpop.eup %733  ;;  %v613_v63 = vadd.f32 -1.0, %v732_v48  ;;  %745 = vpow2.f32 %v497_v60  ;;  %v996_v30 = vadd.f32 %v970_v23, %v424_v2  ;;  %v688_v56 = vpop.f32.mrb[10].mxu1 }
 0x1e6   :  { %v736_v50 = vpop.eup %735  ;;  %v611_v53 = vadd.f32 -1.0, %v734_v62  ;;  %v481_v7 = vmin.f32 %v993_v0, 0.0  ;;  %v427_v8 = vpop.f32.mrb[11].mxu1  ;;  %v1009_v15 = vadd.f32 %v688_v56, %v970_v23  ;;  %vm465_vm11 = vcmp.gt.f32.partialorder %v993_v0, 0.0 }
 0x1e7   :  { %v738_v3 = vpop.eup %737  ;;  %v537_v4 = vsel %vm457_vm3, %v401_v25, %v613_v63  ;;  %v614_v6 = vadd.f32 -1.0, %v736_v50  ;;  %v479_v12 = vmin.f32 %v996_v30, 0.0  ;;  %v1012_v1 = vadd.f32 %v970_v23, %v427_v8 }
 0x1e8   :  { %553 = vst.msk [vmem:[%s1107_s5 + $0x10] sm:$0xff] %vm333_vm2, %v537_v4  ;;  %v535_v10 = vsel %vm455_vm4, %v393_v27, %v611_v53  ;;  %v612_v11 = vadd.f32 -1.0, %v738_v3  ;;  %v507_v14 = vmul.f32 1.442695, %v481_v7  ;;  %v482_v18 = vmin.f32 %v1009_v15, 0.0 }
 0x1e9   :  { %551 = vst.msk [vmem:[%s1107_s5] sm:$0xff] %vm333_vm2, %v535_v10  ;;  %v538_v13 = vsel %vm458_vm5, %v404_v31, %v614_v6  ;;  %v503_v9 = vmul.f32 1.442695, %v479_v12  ;;  %v480_v5 = vmin.f32 %v1012_v1, 0.0  ;;  %vm463_vm12 = vcmp.gt.f32.partialorder %v996_v30, 0.0 }
 0x1ea   :  { %554 = vst.msk [vmem:[%s1107_s5 + $0x18] sm:$0xff] %vm333_vm2, %v538_v13  ;;  %v536_v16 = vsel %vm456_vm6, %v396_v35, %v612_v11  ;;  %747 = vpow2.f32 %v507_v14  ;;  %v509_v22 = vmul.f32 1.442695, %v482_v18  ;;  %vm466_vm13 = vcmp.gt.f32.partialorder %v1009_v15, 0.0 }
 0x1eb   :  { %552 = vst.msk [vmem:[%s1107_s5 + $0x8] sm:$0xff] %vm333_vm2, %v536_v16  ;;  %749 = vpow2.f32 %v503_v9  ;;  %v691_v17 = vpop.f32.mrb[12].mxu1  ;;  %v505_v28 = vmul.f32 1.442695, %v480_v5  ;;  %vm464_vm14 = vcmp.gt.f32.partialorder %v1012_v1, 0.0 }
 0x1ec   :  { %v740_v19 = vpop.eup %739  ;;  %v1026_v24 = vadd.f32 %v691_v17, %v970_v23  ;;  %v440_v25 = vpop.f32.mrb[13].mxu1  ;;  %751 = vpow2.f32 %v509_v22 }
 0x1ed   :  { %v742_v20 = vpop.eup %741  ;;  %v617_v21 = vadd.f32 -1.0, %v740_v19  ;;  %v1030_v29 = vadd.f32 %v970_v23, %v440_v25  ;;  %v692_v31 = vpop.f32.mrb[14].mxu1  ;;  %753 = vpow2.f32 %v505_v28 }
 0x1ee   :  { %v744_v26 = vpop.eup %743  ;;  %v615_v27 = vadd.f32 -1.0, %v742_v20  ;;  %v443_v36 = vpop.f32.mrb[15].mxu1  ;;  %v485_v39 = vmin.f32 %v1026_v24, 0.0  ;;  %v452_v41 = vadd.f32 %v692_v31, %v970_v23  ;;  %vm469_vm15 = vcmp.gt.f32.partialorder %v1026_v24, 0.0 }
 0x1ef   :  { %v746_v32 = vpop.eup %745  ;;  %v541_v33 = vsel %vm461_vm7, %v977_v42, %v617_v21  ;;  %v618_v35 = vadd.f32 -1.0, %v744_v26  ;;  %v483_v40 = vmin.f32 %v1030_v29, 0.0  ;;  %vm467_vm0 = vcmp.gt.f32.partialorder %v1030_v29, 0.0 }
 0x1f0   :  { %557 = vst.msk [vmem:[%s1107_s5 + $0x30] sm:$0xff] %vm333_vm2, %v541_v33  ;;  %v539_v37 = vsel %vm459_vm8, %v980_v44, %v615_v27  ;;  %v616_v38 = vadd.f32 -1.0, %v746_v32  ;;  %v515_v43 = vmul.f32 1.442695, %v485_v39  ;;  %v444_v44 = vadd.f32 %v970_v23, %v443_v36 }
 0x1f1   :  { %555 = vst.msk [vmem:[%s1107_s5 + $0x20] sm:$0xff] %vm333_vm2, %v539_v37  ;;  %v542_v34 = vsel %vm462_vm9, %v984_v47, %v618_v35  ;;  %v511_v45 = vmul.f32 1.442695, %v483_v40  ;;  %v486_v46 = vmin.f32 %v452_v41, 0.0  ;;  %vm470_vm1 = vcmp.gt.f32.partialorder %v452_v41, 0.0 }
 0x1f2   :  { %558 = vst.msk [vmem:[%s1107_s5 + $0x38] sm:$0xff] %vm333_vm2, %v542_v34  ;;  %v540_v42 = vsel %vm460_vm10, %v988_v52, %v616_v38  ;;  %755 = vpow2.f32 %v515_v43  ;;  %v484_v47 = vmin.f32 %v444_v44, 0.0  ;;  %vm468_vm3 = vcmp.gt.f32.partialorder %v444_v44, 0.0 }
 0x1f3   :  { %556 = vst.msk [vmem:[%s1107_s5 + $0x28] sm:$0xff] %vm333_vm2, %v540_v42  ;;  %757 = vpow2.f32 %v511_v45  ;;  %v517_v51 = vmul.f32 1.442695, %v486_v46 }
 0x1f4   :  { %v748_v49 = vpop.eup %747  ;;  %v513_v57 = vmul.f32 1.442695, %v484_v47 }
 0x1f5   :  { %v750_v54 = vpop.eup %749  ;;  %v621_v55 = vadd.f32 -1.0, %v748_v49  ;;  %759 = vpow2.f32 %v517_v51 }
 0x1f6   :  { %v619_v52 = vadd.f32 -1.0, %v750_v54  ;;  %761 = vpow2.f32 %v513_v57  ;;  %v752_v58 = vpop.eup %751 }
 0x1f7   :  { %v545_v23 = vsel %vm465_vm11, %v993_v0, %v621_v55  ;;  %v754_v60 = vpop.eup %753  ;;  %v622_v48 = vadd.f32 -1.0, %v752_v58 }
 0x1f8   :  { %561 = vst.msk [vmem:[%s1107_s5 + $0x50] sm:$0xff] %vm333_vm2, %v545_v23  ;;  %v543_v59 = vsel %vm463_vm12, %v996_v30, %v619_v52  ;;  %v620_v61 = vadd.f32 -1.0, %v754_v60 }
 0x1f9   :  { %559 = vst.msk [vmem:[%s1107_s5 + $0x40] sm:$0xff] %vm333_vm2, %v543_v59  ;;  %v546_v62 = vsel %vm466_vm13, %v1009_v15, %v622_v48 }
 0x1fa   :  { %562 = vst.msk [vmem:[%s1107_s5 + $0x58] sm:$0xff] %vm333_vm2, %v546_v62  ;;  %v544_v63 = vsel %vm464_vm14, %v1012_v1, %v620_v61 }
 0x1fb   :  { %560 = vst.msk [vmem:[%s1107_s5 + $0x48] sm:$0xff] %vm333_vm2, %v544_v63 }
 0x1fc   :  { %v756_v0 = vpop.eup %755 }
 0x1fd   :  { %v758_v2 = vpop.eup %757  ;;  %v625_v50 = vadd.f32 -1.0, %v756_v0 }
 0x1fe   :  { %v623_v53 = vadd.f32 -1.0, %v758_v2 }
 0x1ff   :  { %v760_v30 = vpop.eup %759  ;;  %v549_v56 = vsel %vm469_vm15, %v1026_v24, %v625_v50 }
 0x200   :  { %v762_v3 = vpop.eup %761  ;;  %565 = vst.msk [vmem:[%s1107_s5 + $0x70] sm:$0xff] %vm333_vm2, %v549_v56  ;;  %v547_v4 = vsel %vm467_vm0, %v1030_v29, %v623_v53  ;;  %v626_v6 = vadd.f32 -1.0, %v760_v30 }
 0x201   :  { %563 = vst.msk [vmem:[%s1107_s5 + $0x60] sm:$0xff] %vm333_vm2, %v547_v4  ;;  %v624_v7 = vadd.f32 -1.0, %v762_v3 }
 0x202   :  { %v550_v8 = vsel %vm470_vm1, %v452_v41, %v626_v6 }
 0x203   :  { %566 = vst.msk [vmem:[%s1107_s5 + $0x78] sm:$0xff] %vm333_vm2, %v550_v8  ;;  %v548_v10 = vsel %vm468_vm3, %v444_v44, %v624_v7 }
 0x204   :  { %564 = vst.msk [vmem:[%s1107_s5 + $0x68] sm:$0xff] %vm333_vm2, %v548_v10 }

</bundles_post_ra>
